<compile_context>
chip_gen: v5e
topology: v5e:2x2
jax: 0.10.0
libtpu: 0.0.40
codegen_flags: <defaults>
</compile_context>

<pallas_src>
import jax
import jax.numpy as jnp
from jax.experimental import pallas as pl
from jax.experimental.pallas import tpu as pltpu

LEAKY_SLOPE = 0.01  # PyTorch F.leaky_relu default negative_slope


def _leaky_relu(x):
    return jnp.where(x > 0, x, LEAKY_SLOPE * x)


def decoder_kernel(x_ref,
                   w1_ref, b1_ref,
                   w2_ref, b2_ref,
                   w3_ref, b3_ref,
                   out_ref):
    # x: (B, 64) bf16; weights bf16 (in, out); biases f32 (1, out).
    h1 = jnp.dot(x_ref[...], w1_ref[...],
                 preferred_element_type=jnp.float32) + b1_ref[...]      # (B, 128) f32
    h1 = _leaky_relu(h1)

    h2 = jnp.dot(h1.astype(jnp.bfloat16), w2_ref[...],
                 preferred_element_type=jnp.float32) + b2_ref[...]      # (B, 256) f32
    h2 = _leaky_relu(h2)

    h3 = jnp.dot(h2.astype(jnp.bfloat16), w3_ref[...],
                 preferred_element_type=jnp.float32) + b3_ref[...]      # (B, 896) f32

    out_ref[...] = jax.nn.sigmoid(h3)                                   # in_size != 44


def init_decoder_params(key, *, latent_size, d, scaler, in_size, out_channels):
    """Deterministic synthetic parameters (PyTorch Linear shapes: (out, in))."""
    in_dim = latent_size * d           # standard_embeddings=False, no cond bits
    h1 = d * scaler * scaler
    h2 = d * scaler * scaler * 2
    out_dim = in_size * in_size * out_channels
    sizes = [("fc1", in_dim, h1), ("fc_2", h1, h2), ("fc_out", h2, out_dim)]
    params = {}
    for name, fan_in, fan_out in sizes:
        key, kw, kb = jax.random.split(key, 3)
        bound = 1.0 / (fan_in ** 0.5)
        w = jax.random.uniform(kw, (fan_out, fan_in), jnp.float32, -bound, bound)
        b = jax.random.uniform(kb, (fan_out,), jnp.float32, -bound, bound)
        params[name] = (w, b)
    return params


def decoder_forward(x, task_id, conds, params, *, in_size, out_channels=1):
    # translator is skipped (translate_noise=False) and the conditional code
    # width is 0, so task_id / conds do not enter the math.
    # TODO(synk): external `translator` module not implemented here.
    del task_id, conds
    B = x.shape[0]
    out_dim = in_size * in_size * out_channels
    out_pad = pl.cdiv(out_dim, 128) * 128          # 784 -> 896, lane-dense stores

    def prep(name, pad_out=None):
        w, b = params[name]
        wt = w.T.astype(jnp.bfloat16)              # (in, out) bf16 matmul operand
        bb = b.reshape(1, -1).astype(jnp.float32)  # (1, out)  f32 bias
        if pad_out is not None and pad_out > wt.shape[1]:
            extra = pad_out - wt.shape[1]
            wt = jnp.pad(wt, ((0, 0), (0, extra)))
            bb = jnp.pad(bb, ((0, 0), (0, extra)))
        return wt, bb

    w1, b1 = prep("fc1")
    w2, b2 = prep("fc_2")
    w3, b3 = prep("fc_out", pad_out=out_pad)

    x_bf16 = x.astype(jnp.bfloat16)

    flops = 2 * B * (w1.shape[0] * w1.shape[1]
                     + w2.shape[0] * w2.shape[1]
                     + w3.shape[0] * w3.shape[1])
    bytes_accessed = (x_bf16.size * 2
                      + (w1.size + w2.size + w3.size) * 2
                      + (b1.size + b2.size + b3.size) * 4
                      + B * out_pad * 4)

    vmem = pl.BlockSpec(memory_space=pltpu.MemorySpace.VMEM)

    out_padded = pl.pallas_call(
        decoder_kernel,
        out_shape=jax.ShapeDtypeStruct((B, out_pad), jnp.float32),
        in_specs=[vmem] * 7,
        out_specs=vmem,
        cost_estimate=pl.CostEstimate(flops=flops,
                                      transcendentals=B * out_pad,
                                      bytes_accessed=bytes_accessed),
    )(x_bf16, w1, b1, w2, b2, w3, b3)

    out = out_padded[:, :out_dim]
    return out.reshape(B, out_channels, in_size, in_size)


def reference_forward(x, params, *, in_size, out_channels=1):
    """Pure-JAX f32 reference mirroring the PyTorch fc-branch forward."""
    h = x.astype(jnp.float32)
    w, b = params["fc1"]
    h = _leaky_relu(h @ w.T + b)
    w, b = params["fc_2"]
    h = _leaky_relu(h @ w.T + b)
    w, b = params["fc_out"]
    h = jax.nn.sigmoid(h @ w.T + b)
    return h.reshape(h.shape[0], out_channels, in_size, in_size)


if __name__ == "__main__":
    # Module config: in_size=28 -> scaler=4, out_channels=1; fc=True.
    latent_size = 8
    d = 8
    in_size = 28
    scaler = 4
    out_channels = 1
    batch = 2

    key = jax.random.PRNGKey(0)
    key, kx, kc = jax.random.split(key, 3)
    x = jax.random.normal(kx, (batch, latent_size * d), jnp.float32)
    task_id = 0                                     # unused (translator skipped)
    conds = jax.random.randint(kc, (batch,), 0, 10)  # unused (no conditional bits)

    params = init_decoder_params(key, latent_size=latent_size, d=d, scaler=scaler,
                                 in_size=in_size, out_channels=out_channels)

    out = decoder_forward(x, task_id, conds, params,
                          in_size=in_size, out_channels=out_channels)
    jax.block_until_ready(out)

    # Sanity check against the plain-JAX f32 reference of the same PyTorch math.
    # Tolerances loosened because matmul operands inside the kernel are bf16.
    ref = reference_forward(x, params, in_size=in_size, out_channels=out_channels)
    assert out.shape == (batch, out_channels, in_size, in_size)
    assert jnp.all(jnp.isfinite(out))
    assert jnp.allclose(out, ref, atol=2e-2, rtol=2e-2)

    print("KERNEL_OK")
</pallas_src>

<mosaic_0001>
module attributes {stable_mosaic.version = 11 : i64} {
  func.func @decoder_kernel(%arg0: memref<2x64xbf16, #tpu.memory_space<vmem>>, %arg1: memref<64x128xbf16, #tpu.memory_space<vmem>>, %arg2: memref<1x128xf32, #tpu.memory_space<vmem>>, %arg3: memref<128x256xbf16, #tpu.memory_space<vmem>>, %arg4: memref<1x256xf32, #tpu.memory_space<vmem>>, %arg5: memref<256x896xbf16, #tpu.memory_space<vmem>>, %arg6: memref<1x896xf32, #tpu.memory_space<vmem>>, %arg7: memref<2x896xf32, #tpu.memory_space<vmem>>) attributes {dimension_semantics = [], scalar_prefetch = 0 : i64, scratch_operands = 0 : i64, tpu.core_type = #tpu.core_type<tc>} {
    %c0 = arith.constant 0 : index
    %c0_0 = arith.constant 0 : index
    %0 = vector.load %arg0[%c0, %c0_0] : memref<2x64xbf16, #tpu.memory_space<vmem>>, vector<2x64xbf16>
    %c0_1 = arith.constant 0 : index
    %c0_2 = arith.constant 0 : index
    %1 = vector.load %arg1[%c0_1, %c0_2] : memref<64x128xbf16, #tpu.memory_space<vmem>>, vector<64x128xbf16>
    %cst = arith.constant dense<0.000000e+00> : vector<2x128xf32>
    %2 = tpu.matmul %0, %1, %cst {dimension_numbers = #tpu.dot_dimension_numbers<[1], [0], [0], [1], [0, 0, 1, 1], [], []>} : vector<2x64xbf16>, vector<64x128xbf16>, vector<2x128xf32> -> vector<2x128xf32>
    %c0_3 = arith.constant 0 : index
    %c0_4 = arith.constant 0 : index
    %3 = vector.load %arg2[%c0_3, %c0_4] : memref<1x128xf32, #tpu.memory_space<vmem>>, vector<1x128xf32>
    %4 = vector.broadcast %3 : vector<1x128xf32> to vector<2x128xf32>
    %5 = arith.addf %2, %4 : vector<2x128xf32>
    %cst_5 = arith.constant 0.000000e+00 : f32
    %6 = vector.broadcast %cst_5 : f32 to vector<2x128xf32>
    %7 = arith.cmpf ogt, %5, %6 : vector<2x128xf32>
    %cst_6 = arith.constant 0.00999999977 : f32
    %8 = vector.broadcast %cst_6 : f32 to vector<2x128xf32>
    %9 = arith.mulf %8, %5 : vector<2x128xf32>
    %10 = arith.select %7, %5, %9 : vector<2x128xi1>, vector<2x128xf32>
    %11 = arith.truncf %10 : vector<2x128xf32> to vector<2x128xbf16>
    %c0_7 = arith.constant 0 : index
    %c0_8 = arith.constant 0 : index
    %12 = vector.load %arg3[%c0_7, %c0_8] : memref<128x256xbf16, #tpu.memory_space<vmem>>, vector<128x256xbf16>
    %cst_9 = arith.constant dense<0.000000e+00> : vector<2x256xf32>
    %13 = tpu.matmul %11, %12, %cst_9 {dimension_numbers = #tpu.dot_dimension_numbers<[1], [0], [0], [1], [0, 0, 1, 1], [], []>} : vector<2x128xbf16>, vector<128x256xbf16>, vector<2x256xf32> -> vector<2x256xf32>
    %c0_10 = arith.constant 0 : index
    %c0_11 = arith.constant 0 : index
    %14 = vector.load %arg4[%c0_10, %c0_11] : memref<1x256xf32, #tpu.memory_space<vmem>>, vector<1x256xf32>
    %15 = vector.broadcast %14 : vector<1x256xf32> to vector<2x256xf32>
    %16 = arith.addf %13, %15 : vector<2x256xf32>
    %cst_12 = arith.constant 0.000000e+00 : f32
    %17 = vector.broadcast %cst_12 : f32 to vector<2x256xf32>
    %18 = arith.cmpf ogt, %16, %17 : vector<2x256xf32>
    %cst_13 = arith.constant 0.00999999977 : f32
    %19 = vector.broadcast %cst_13 : f32 to vector<2x256xf32>
    %20 = arith.mulf %19, %16 : vector<2x256xf32>
    %21 = arith.select %18, %16, %20 : vector<2x256xi1>, vector<2x256xf32>
    %22 = arith.truncf %21 : vector<2x256xf32> to vector<2x256xbf16>
    %c0_14 = arith.constant 0 : index
    %c0_15 = arith.constant 0 : index
    %23 = vector.load %arg5[%c0_14, %c0_15] : memref<256x896xbf16, #tpu.memory_space<vmem>>, vector<256x896xbf16>
    %cst_16 = arith.constant dense<0.000000e+00> : vector<2x896xf32>
    %24 = tpu.matmul %22, %23, %cst_16 {dimension_numbers = #tpu.dot_dimension_numbers<[1], [0], [0], [1], [0, 0, 1, 1], [], []>} : vector<2x256xbf16>, vector<256x896xbf16>, vector<2x896xf32> -> vector<2x896xf32>
    %c0_17 = arith.constant 0 : index
    %c0_18 = arith.constant 0 : index
    %25 = vector.load %arg6[%c0_17, %c0_18] : memref<1x896xf32, #tpu.memory_space<vmem>>, vector<1x896xf32>
    %26 = vector.broadcast %25 : vector<1x896xf32> to vector<2x896xf32>
    %27 = arith.addf %24, %26 : vector<2x896xf32>
    %28 = arith.negf %27 : vector<2x896xf32>
    %29 = math.exp %28 : vector<2x896xf32>
    %cst_19 = arith.constant 1.000000e+00 : f32
    %30 = vector.broadcast %cst_19 : f32 to vector<2x896xf32>
    %31 = arith.addf %30, %29 : vector<2x896xf32>
    %32 = arith.divf %30, %31 : vector<2x896xf32>
    %c0_20 = arith.constant 0 : index
    %c0_21 = arith.constant 0 : index
    %33 = vector.load %arg7[%c0_20, %c0_21] : memref<2x896xf32, #tpu.memory_space<vmem>>, vector<2x896xf32>
    tpu.vector_store %arg7[%c0_20, %c0_21], %32 {strides = array<i32>} : memref<2x896xf32, #tpu.memory_space<vmem>>, vector<2x896xf32>,
    return
  }
}

</mosaic_0001>

<bundles_post_ra>
// kernel: tpu_custom_call.1
= control target key start
LH: loop header
LB: loop body
LE: loop exit
PB: predicated region body
PF: predicated region fallthrough
CT: control target
= control target key end

     0   :  { %12 = vsyncpa [#allocation3], 0  ;;  %s2408_s0 = inlined_call_operand.hbm [shape: bf16[2,64], index: 0, kind: input, shape index: {}]   ;;  %s2409_s1 = inlined_call_operand.hbm [shape: bf16[64,128], index: 1, kind: input, shape index: {}]   ;;  %s2410_s2 = inlined_call_operand.vmem [shape: f32[1,128], index: 2, kind: input, shape index: {}]   ;;  %s2411_s3 = inlined_call_operand.hbm [shape: bf16[128,256], index: 3, kind: input, shape index: {}]   ;;  %s2412_s4 = inlined_call_operand.vmem [shape: f32[1,256], index: 4, kind: input, shape index: {}]   ;;  %s2413_s5 = inlined_call_operand.hbm [shape: bf16[256,896], index: 5, kind: input, shape index: {}]   ;;  %s2414_s6 = inlined_call_operand.hbm [shape: f32[1,896], index: 6, kind: input, shape index: {}]   ;;  %s2415_s7 = inlined_call_operand.hbm [shape: f32[2,896], index: 7, kind: output, shape index: {}]  }
   0x1   :  { %13 = vsyncpa [#allocation6], 0 }
   0x2   :  { %14 = vsyncpa [#allocation9], 0  ;;  %s31_s26 = sshll.u32 %s2409_s1, 4  ;;  %s32_s26 = int_to_ptr.hbm [resolvable:$true] %s31_s26 }
   0x3   :  { %15 = vsyncpa [#allocation4], 0  ;;  %s2235_s27 = smov [#allocation5]   ;;  %s61_s8 = sshll.u32 %s2413_s5, 4  ;;  %s62_s8 = int_to_ptr.hbm [resolvable:$true] %s61_s8 }
   0x4   :  { %s33_s28 = sshll.u32 %s2235_s27, 4  ;;  %s2236_s9 = smov 64   ;;  %s34_s28 = int_to_ptr.vmem [resolvable:$true] %s33_s28 }
   0x5   :  { %s2237_s10 = smov 4   ;;  %s2238_s11 = smov [#allocation8]  }
   0x6   :  { %39 = dma.hbm_to_vmem [thread:$0]  %s32_s26, 512, %s34_s28, [#allocation6], %s2236_s9, %s2236_s9, %s2237_s10  }
   0x7   :  { %s63_s12 = sshll.u32 %s2238_s11, 4  ;;  %s2239_s13 = smov 448   ;;  %s64_s12 = int_to_ptr.vmem [resolvable:$true] %s63_s12 }
   0x8   :  { %s2240_s14 = smov 28   ;;  %s21_s16 = sshll.u32 %s2408_s0, 4  ;;  %s22_s16 = int_to_ptr.hbm [resolvable:$true] %s21_s16 }
   0x9   :  { %69 = dma.hbm_to_vmem [thread:$0]  %s62_s8, 14336, %s64_s12, [#allocation9], %s2239_s13, %s2239_s13, %s2240_s14  }
   0xa   :  { %s2241_s17 = smov [#allocation2]   ;;  %s46_s20 = sshll.u32 %s2411_s3, 4  ;;  %s47_s20 = int_to_ptr.hbm [resolvable:$true] %s46_s20 }
   0xb   :  { %s23_s18 = sshll.u32 %s2241_s17, 4  ;;  %s2242_s21 = smov [#allocation7]   ;;  %s24_s18 = int_to_ptr.vmem [resolvable:$true] %s23_s18 }
   0xc   :  { %26 = dma.hbm_to_vmem [thread:$0]  %s22_s16, 16, %s24_s18, [#allocation3]  }
   0xd   :  { %s48_s22 = sshll.u32 %s2242_s21, 4  ;;  %s2243_s23 = smov 128   ;;  %s49_s22 = int_to_ptr.vmem [resolvable:$true] %s48_s22 }
   0xe   :  { %s2244_s24 = smov 8   ;;  %s75_s0 = sshll.u32 %s2414_s6, 4  ;;  %s76_s0 = int_to_ptr.hbm [resolvable:$true] %s75_s0 }
   0xf   :  { %54 = dma.hbm_to_vmem [thread:$0]  %s47_s20, 2048, %s49_s22, [#allocation6], %s2243_s23, %s2243_s23, %s2244_s24  }
  0x10   :  { %s2245_s27 = smov [#allocation10]  }
  0x11   :  { %s77_s28 = sshll.u32 %s2245_s27, 4  ;;  %s78_s28 = int_to_ptr.vmem [resolvable:$true] %s77_s28 }
  0x12   :  { %80 = dma.hbm_to_vmem [thread:$0]  %s76_s0, 112, %s78_s28, [#allocation9]  }
  0x13   :  { %2227 = dma.done.wait [#allocation3], 16  }
  0x14   :  { %2228 = vsyncadd [#allocation3], 4294967280 }
  0x15   :  { %2229 = dma.done.wait [#allocation6], 2560  }
  0x16   :  { %2230 = vsyncadd [#allocation6], 4294964736 }
  0x17   :  { %2231 = dma.done.wait [#allocation9], 14448  }
  0x18   :  { %2232 = vsyncadd [#allocation9], 4294952848  ;;  %v1913_v0 = vld [vmem:[#allocation5 + $0x18] sm:$0xff]  ;;  %v1912_v1 = vld [vmem:[#allocation5 + $0x10] sm:$0xff]  ;;  %vm139_vm0 = vcmask 523264   ;;  %s1362_s10 = sshll.u32 %s2415_s7, 4  ;;  %s1363_s10 = int_to_ptr.hbm [resolvable:$true] %s1362_s10 }
  0x19   :  { %v1449_v2 = vld [vmem:[#allocation7 + $0x70] sm:$0xf]  ;;  %147 = vmatpush.bf16.msra.mxu0 %v1913_v0  ;;  %v1929_v3 = vld [vmem:[#allocation7 + $0x74] sm:$0xf0]  ;;  %v1928_v4 = vld [vmem:[#allocation7 + $0x74] sm:$0xf] }
  0x1a   :  { %v1451_v5 = vld [vmem:[#allocation7 + $0x78] sm:$0xf0]  ;;  %v1450_v6 = vor.u32 %v1929_v3, %v1449_v2  ;;  %v1441_v8 = vld [vmem:[#allocation7 + $0x60] sm:$0xf]  ;;  %v1927_v9 = vld [vmem:[#allocation7 + $0x64] sm:$0xf0] }
  0x1b   :  { %v1454_v7 = vor.u32 %v1928_v4, %v1451_v5  ;;  %v1926_v10 = vld [vmem:[#allocation7 + $0x64] sm:$0xf]  ;;  %v1443_v11 = vld [vmem:[#allocation7 + $0x68] sm:$0xf0]  ;;  %v1442_v13 = vor.u32 %v1927_v9, %v1441_v8  ;;  %v1433_v15 = vld [vmem:[#allocation7 + $0x50] sm:$0xf] }
  0x1c   :  { %v1911_v12 = vld [vmem:[#allocation5 + $0x8] sm:$0xff]  ;;  %262 = vmatpush.bf16.msra.mxu1 %v1450_v6  ;;  %v1446_v14 = vor.u32 %v1926_v10, %v1443_v11  ;;  %v1925_v16 = vld [vmem:[#allocation7 + $0x54] sm:$0xf0]  ;;  %v1924_v17 = vld [vmem:[#allocation7 + $0x54] sm:$0xf] }
  0x1d   :  { %275 = vmatpush.bf16.msra.mxu2 %v1454_v7  ;;  %148 = vmatpush.bf16.msra.mxu0 %v1912_v1  ;;  %v1435_v18 = vld [vmem:[#allocation7 + $0x58] sm:$0xf0]  ;;  %v1434_v19 = vor.u32 %v1925_v16, %v1433_v15  ;;  %v1910_v21 = vld [vmem:[#allocation5] sm:$0xff]  ;;  %v1923_v23 = vld [vmem:[#allocation7 + $0x44] sm:$0xf0] }
  0x1e   :  { %v1438_v20 = vor.u32 %v1924_v17, %v1435_v18  ;;  %v1425_v22 = vld [vmem:[#allocation7 + $0x40] sm:$0xf]  ;;  %v1922_v24 = vld [vmem:[#allocation7 + $0x44] sm:$0xf]  ;;  %v1427_v25 = vld [vmem:[#allocation7 + $0x48] sm:$0xf0] }
  0x1f   :  { %v1426_v26 = vor.u32 %v1923_v23, %v1425_v22  ;;  %v102_v27 = vld [vmem:[#allocation2] sm:$0x1]  ;;  %v1430_v28 = vor.u32 %v1922_v24, %v1427_v25  ;;  %v1417_v29 = vld [vmem:[#allocation7 + $0x30] sm:$0xf]  ;;  %v1921_v30 = vld [vmem:[#allocation7 + $0x34] sm:$0xf0] }
  0x20   :  { %263 = vmatpush.bf16.msra.mxu1 %v1442_v13  ;;  %v1920_v31 = vld [vmem:[#allocation7 + $0x34] sm:$0xf]  ;;  %v1419_v32 = vld [vmem:[#allocation7 + $0x38] sm:$0xf0]  ;;  %v1418_v33 = vor.u32 %v1921_v30, %v1417_v29  ;;  %v1409_v35 = vld [vmem:[#allocation7 + $0x20] sm:$0xf] }
  0x21   :  { %276 = vmatpush.bf16.msra.mxu2 %v1446_v14  ;;  %149 = vmatpush.bf16.msra.mxu0 %v1911_v12  ;;  %v1422_v34 = vor.u32 %v1920_v31, %v1419_v32  ;;  %v1919_v36 = vld [vmem:[#allocation7 + $0x24] sm:$0xf0]  ;;  %v1918_v37 = vld [vmem:[#allocation7 + $0x24] sm:$0xf]  ;;  %v1411_v38 = vld [vmem:[#allocation7 + $0x28] sm:$0xf0] }
  0x22   :  { %v1410_v39 = vor.u32 %v1919_v36, %v1409_v35  ;;  %v1414_v40 = vor.u32 %v1918_v37, %v1411_v38  ;;  %v1401_v41 = vld [vmem:[#allocation7 + $0x10] sm:$0xf]  ;;  %v1917_v42 = vld [vmem:[#allocation7 + $0x14] sm:$0xf0]  ;;  %v1916_v43 = vld [vmem:[#allocation7 + $0x14] sm:$0xf] }
  0x23   :  { %v1402_v44 = vor.u32 %v1917_v42, %v1401_v41  ;;  %v1403_v45 = vld [vmem:[#allocation7 + $0x18] sm:$0xf0]  ;;  %v1393_v47 = vld [vmem:[#allocation7] sm:$0xf]  ;;  %v1915_v48 = vld [vmem:[#allocation7 + $0x4] sm:$0xf0] }
  0x24   :  { %264 = vmatpush.bf16.msra.mxu1 %v1434_v19  ;;  %v1406_v46 = vor.u32 %v1916_v43, %v1403_v45  ;;  %v1914_v49 = vld [vmem:[#allocation7 + $0x4] sm:$0xf]  ;;  %v1394_v50 = vor.u32 %v1915_v48, %v1393_v47  ;;  %v1395_v51 = vld [vmem:[#allocation7 + $0x8] sm:$0xf0]  ;;  %v1653_v53 = vld [vmem:[#allocation8 + $0x188] sm:$0xf] }
  0x25   :  { %277 = vmatpush.bf16.msra.mxu2 %v1438_v20  ;;  %150 = vmatpush.bf16.msra.mxu0 %v1910_v21  ;;  %v1398_v52 = vor.u32 %v1914_v49, %v1395_v51  ;;  %v1982_v54 = vld [vmem:[#allocation8 + $0x1a0] sm:$0xf0]  ;;  %v1979_v55 = vld [vmem:[#allocation8 + $0x18c] sm:$0xf]  ;;  %v1655_v57 = vld [vmem:[#allocation8 + $0x1a4] sm:$0xf0] }
  0x26   :  { %v1654_v56 = vor.u32 %v1982_v54, %v1653_v53  ;;  %v1625_v58 = vld [vmem:[#allocation8 + $0x150] sm:$0xf]  ;;  %v1975_v59 = vld [vmem:[#allocation8 + $0x168] sm:$0xf0]  ;;  %v1658_v60 = vor.u32 %v1979_v55, %v1655_v57  ;;  %v1972_v61 = vld [vmem:[#allocation8 + $0x154] sm:$0xf] }
  0x27   :  { %v1627_v62 = vld [vmem:[#allocation8 + $0x16c] sm:$0xf0]  ;;  %v1877_v63 = vld [vmem:[#allocation8 + $0x348] sm:$0xf]  ;;  %v1626_v0 = vor.u32 %v1975_v59, %v1625_v58  ;;  %v2038_v1 = vld [vmem:[#allocation8 + $0x360] sm:$0xf0] }
  0x28   :  { %1390 = vmatmul.msk.bf16.vlgmr.msra.gmra.mxu0 %vm139_vm0, %v102_v27  ;;  %265 = vmatpush.bf16.msra.mxu1 %v1426_v26  ;;  %v2035_v2 = vld [vmem:[#allocation8 + $0x34c] sm:$0xf]  ;;  %v1879_v3 = vld [vmem:[#allocation8 + $0x364] sm:$0xf0]  ;;  %v1630_v4 = vor.u32 %v1972_v61, %v1627_v62  ;;  %v1878_v5 = vor.u32 %v2038_v1, %v1877_v63  ;;  %v1597_v7 = vld [vmem:[#allocation8 + $0x118] sm:$0xf] }
  0x29   :  { %278 = vmatpush.bf16.msra.mxu2 %v1430_v28  ;;  %1016 = vmatpush.bf16.msra.mxu3 %v1654_v56  ;;  %v1882_v6 = vor.u32 %v2035_v2, %v1879_v3  ;;  %v1968_v8 = vld [vmem:[#allocation8 + $0x130] sm:$0xf0]  ;;  %v1965_v9 = vld [vmem:[#allocation8 + $0x11c] sm:$0xf]  ;;  %v1599_v10 = vld [vmem:[#allocation8 + $0x134] sm:$0xf0] }
  0x2a   :  { %v1849_v11 = vld [vmem:[#allocation8 + $0x310] sm:$0xf]  ;;  %v2031_v12 = vld [vmem:[#allocation8 + $0x328] sm:$0xf0]  ;;  %1029 = vmatpush.bf16.msrb.mxu0 %v1878_v5  ;;  %v2028_v14 = vld [vmem:[#allocation8 + $0x314] sm:$0xf]  ;;  %v1598_v16 = vor.u32 %v1968_v8, %v1597_v7  ;;  %v1602_v20 = vor.u32 %v1965_v9, %v1599_v10 }
  0x2b   :  { %v1850_v13 = vor.u32 %v2031_v12, %v1849_v11  ;;  %v1851_v15 = vld [vmem:[#allocation8 + $0x32c] sm:$0xf0]  ;;  %v1569_v18 = vld [vmem:[#allocation8 + $0xe0] sm:$0xf]  ;;  %v1961_v19 = vld [vmem:[#allocation8 + $0xf8] sm:$0xf0] }
  0x2c   :  { %266 = vmatpush.bf16.msra.mxu1 %v1418_v33  ;;  %v1854_v17 = vor.u32 %v2028_v14, %v1851_v15  ;;  %v1821_v21 = vld [vmem:[#allocation8 + $0x2d8] sm:$0xf]  ;;  %v2024_v22 = vld [vmem:[#allocation8 + $0x2f0] sm:$0xf0]  ;;  %v2021_v23 = vld [vmem:[#allocation8 + $0x2dc] sm:$0xf]  ;;  %v1570_v30 = vor.u32 %v1961_v19, %v1569_v18 }
  0x2d   :  { %279 = vmatpush.bf16.msra.mxu2 %v1422_v34  ;;  %1017 = vmatpush.bf16.msra.mxu3 %v1626_v0  ;;  %v1958_v24 = vld [vmem:[#allocation8 + $0xe4] sm:$0xf]  ;;  %v1571_v25 = vld [vmem:[#allocation8 + $0xfc] sm:$0xf0]  ;;  %v1823_v26 = vld [vmem:[#allocation8 + $0x2f4] sm:$0xf0]  ;;  %v1822_v27 = vor.u32 %v2024_v22, %v1821_v21 }
  0x2e   :  { %1030 = vmatpush.bf16.msrb.mxu0 %v1850_v13  ;;  %v1826_v28 = vor.u32 %v2021_v23, %v1823_v26  ;;  %v1793_v29 = vld [vmem:[#allocation8 + $0x2a0] sm:$0xf]  ;;  %v2017_v31 = vld [vmem:[#allocation8 + $0x2b8] sm:$0xf0]  ;;  %v2014_v32 = vld [vmem:[#allocation8 + $0x2a4] sm:$0xf]  ;;  %v1574_v34 = vor.u32 %v1958_v24, %v1571_v25 }
  0x2f   :  { %v1795_v33 = vld [vmem:[#allocation8 + $0x2bc] sm:$0xf0]  ;;  %v1541_v35 = vld [vmem:[#allocation8 + $0xa8] sm:$0xf]  ;;  %v1954_v36 = vld [vmem:[#allocation8 + $0xc0] sm:$0xf0] }
  0x30   :  { %267 = vmatpush.bf16.msra.mxu1 %v1410_v39  ;;  %v1951_v37 = vld [vmem:[#allocation8 + $0xac] sm:$0xf]  ;;  %v1543_v38 = vld [vmem:[#allocation8 + $0xc4] sm:$0xf0]  ;;  %v1794_v39 = vor.u32 %v2017_v31, %v1793_v29  ;;  %v1542_v42 = vor.u32 %v1954_v36, %v1541_v35  ;;  %v2010_v43 = vld [vmem:[#allocation8 + $0x280] sm:$0xf0] }
  0x31   :  { %280 = vmatpush.bf16.msra.mxu2 %v1414_v40  ;;  %1018 = vmatpush.bf16.msra.mxu3 %v1598_v16  ;;  %v1798_v40 = vor.u32 %v2014_v32, %v1795_v33  ;;  %v1765_v41 = vld [vmem:[#allocation8 + $0x268] sm:$0xf]  ;;  %v1513_v47 = vld [vmem:[#allocation8 + $0x70] sm:$0xf]  ;;  %v1947_v48 = vld [vmem:[#allocation8 + $0x88] sm:$0xf0] }
  0x32   :  { %1031 = vmatpush.bf16.msrb.mxu0 %v1822_v27  ;;  %v1767_v45 = vld [vmem:[#allocation8 + $0x284] sm:$0xf0]  ;;  %v1944_v49 = vld [vmem:[#allocation8 + $0x74] sm:$0xf]  ;;  %v1766_v51 = vor.u32 %v2010_v43, %v1765_v41  ;;  %v1737_v53 = vld [vmem:[#allocation8 + $0x230] sm:$0xf]  ;;  %v1514_v54 = vor.u32 %v1947_v48, %v1513_v47 }
  0x33   :  { %v2003_v55 = vld [vmem:[#allocation8 + $0x248] sm:$0xf0]  ;;  %v2000_v56 = vld [vmem:[#allocation8 + $0x234] sm:$0xf]  ;;  %v1739_v57 = vld [vmem:[#allocation8 + $0x24c] sm:$0xf0] }
  0x34   :  { %268 = vmatpush.bf16.msra.mxu1 %v1402_v44  ;;  %v2007_v44 = vld [vmem:[#allocation8 + $0x26c] sm:$0xf]  ;;  %v1485_v59 = vld [vmem:[#allocation8 + $0x38] sm:$0xf]  ;;  %v2054_v61 = vld [vmem:[%s2410_s2] ss:$0 sm:$0xff]  ;;  %v1738_v0 = vor.u32 %v2003_v55, %v1737_v53  ;;  %v1742_v1 = vor.u32 %v2000_v56, %v1739_v57 }
  0x35   :  { %281 = vmatpush.bf16.msra.mxu2 %v1406_v46  ;;  %1019 = vmatpush.bf16.msra.mxu3 %v1570_v30  ;;  %v1546_v46 = vor.u32 %v1951_v37, %v1543_v38  ;;  %v1937_v62 = vld [vmem:[#allocation8 + $0x3c] sm:$0xf]  ;;  %v1487_v63 = vld [vmem:[#allocation8 + $0x54] sm:$0xf0]  ;;  %v1457_v2 = vld [vmem:[#allocation8] sm:$0xf] }
  0x36   :  { %1032 = vmatpush.bf16.msrb.mxu0 %v1794_v39  ;;  %v1709_v3 = vld [vmem:[#allocation8 + $0x1f8] sm:$0xf]  ;;  %v1996_v5 = vld [vmem:[#allocation8 + $0x210] sm:$0xf0]  ;;  %v1490_v9 = vor.u32 %v1937_v62, %v1487_v63  ;;  %v1933_v10 = vld [vmem:[#allocation8 + $0x18] sm:$0xf0] }
  0x37   :  { %v1711_v7 = vld [vmem:[#allocation8 + $0x214] sm:$0xf0]  ;;  %v1930_v11 = vld [vmem:[#allocation8 + $0x4] sm:$0xf]  ;;  %v1459_v12 = vld [vmem:[#allocation8 + $0x1c] sm:$0xf0]  ;;  %v1458_v23 = vor.u32 %v1933_v10, %v1457_v2 }
  0x38   :  { %269 = vmatpush.bf16.msra.mxu1 %v1394_v50  ;;  %v1515_v50 = vld [vmem:[#allocation8 + $0x8c] sm:$0xf0]  ;;  %v1983_v15 = vld [vmem:[#allocation8 + $0x1a8] sm:$0xf0]  ;;  %v1980_v16 = vld [vmem:[#allocation8 + $0x194] sm:$0xf]  ;;  %v1462_v29 = vor.u32 %v1930_v11, %v1459_v12 }
  0x39   :  { %282 = vmatpush.bf16.msra.mxu2 %v1398_v52  ;;  %v1770_v52 = vor.u32 %v2007_v44, %v1767_v45  ;;  %1020 = vmatpush.bf16.msra.mxu3 %v1542_v42  ;;  %v1518_v58 = vor.u32 %v1944_v49, %v1515_v50  ;;  %v1661_v14 = vld [vmem:[#allocation8 + $0x190] sm:$0xf]  ;;  %v1989_v21 = vld [vmem:[#allocation8 + $0x1d8] sm:$0xf0]  ;;  %v1986_v24 = vld [vmem:[#allocation8 + $0x1c4] sm:$0xf] }
  0x3a   :  { %1033 = vmatpush.bf16.msrb.mxu0 %v1766_v51  ;;  %v1663_v18 = vld [vmem:[#allocation8 + $0x1ac] sm:$0xf0]  ;;  %v1683_v25 = vld [vmem:[#allocation8 + $0x1dc] sm:$0xf0]  ;;  %v2039_v27 = vld [vmem:[#allocation8 + $0x368] sm:$0xf0]  ;;  %v1662_v30 = vor.u32 %v1983_v15, %v1661_v14 }
  0x3b   :  { %v1885_v26 = vld [vmem:[#allocation8 + $0x350] sm:$0xf]  ;;  %v2036_v31 = vld [vmem:[#allocation8 + $0x354] sm:$0xf]  ;;  %v1633_v35 = vld [vmem:[#allocation8 + $0x158] sm:$0xf] }
  0x3c   :  { %1042 = vmatpush.bf16.msrb.mxu1 %v1658_v60  ;;  %v1940_v60 = vld [vmem:[#allocation8 + $0x50] sm:$0xf0]  ;;  %v1887_v32 = vld [vmem:[#allocation8 + $0x36c] sm:$0xf0]  ;;  %v1973_v38 = vld [vmem:[#allocation8 + $0x15c] sm:$0xf]  ;;  %v1886_v41 = vor.u32 %v2039_v27, %v1885_v26 }
  0x3d   :  { %1055 = vmatpush.bf16.msrb.mxu2 %v1882_v6  ;;  %1021 = vmatpush.bf16.msra.mxu3 %v1514_v54  ;;  %v1993_v6 = vld [vmem:[#allocation8 + $0x1fc] sm:$0xf]  ;;  %v1976_v36 = vld [vmem:[#allocation8 + $0x170] sm:$0xf0]  ;;  %v1635_v39 = vld [vmem:[#allocation8 + $0x174] sm:$0xf0]  ;;  %v1890_v43 = vor.u32 %v2036_v31, %v1887_v32 }
  0x3e   :  { %1034 = vmatpush.bf16.msrb.mxu0 %v1738_v0  ;;  %v1714_v19 = vor.u32 %v1993_v6, %v1711_v7  ;;  %v1857_v44 = vld [vmem:[#allocation8 + $0x318] sm:$0xf]  ;;  %v2032_v45 = vld [vmem:[#allocation8 + $0x330] sm:$0xf0]  ;;  %v2029_v47 = vld [vmem:[#allocation8 + $0x31c] sm:$0xf]  ;;  %v1638_v49 = vor.u32 %v1973_v38, %v1635_v39 }
  0x3f   :  { %v1859_v48 = vld [vmem:[#allocation8 + $0x334] sm:$0xf0]  ;;  %v1605_v50 = vld [vmem:[#allocation8 + $0x120] sm:$0xf]  ;;  %v1969_v51 = vld [vmem:[#allocation8 + $0x138] sm:$0xf0]  ;;  %v1858_v54 = vor.u32 %v2032_v45, %v1857_v44 }
  0x40   :  { %1043 = vmatpush.bf16.msrb.mxu1 %v1630_v4  ;;  %v1486_v4 = vor.u32 %v1940_v60, %v1485_v59  ;;  %v1607_v53 = vld [vmem:[#allocation8 + $0x13c] sm:$0xf0]  ;;  %v1862_v55 = vor.u32 %v2029_v47, %v1859_v48  ;;  %v2025_v57 = vld [vmem:[#allocation8 + $0x2f8] sm:$0xf0]  ;;  %v2022_v59 = vld [vmem:[#allocation8 + $0x2e4] sm:$0xf] }
  0x41   :  { %1056 = vmatpush.bf16.msrb.mxu2 %v1854_v17  ;;  %v1710_v17 = vor.u32 %v1996_v5, %v1709_v3  ;;  %v1829_v56 = vld [vmem:[#allocation8 + $0x2e0] sm:$0xf]  ;;  %v1577_v62 = vld [vmem:[#allocation8 + $0xe8] sm:$0xf]  ;;  %v1962_v63 = vld [vmem:[#allocation8 + $0x100] sm:$0xf0] }
  0x42   :  { %1022 = vmatpush.bf16.msra.mxu3 %v1486_v4  ;;  %v1831_v60 = vld [vmem:[#allocation8 + $0x2fc] sm:$0xf0]  ;;  %v1959_v0 = vld [vmem:[#allocation8 + $0xec] sm:$0xf]  ;;  %v1830_v2 = vor.u32 %v2025_v57, %v1829_v56  ;;  %v1801_v4 = vld [vmem:[#allocation8 + $0x2a8] sm:$0xf]  ;;  %v1578_v6 = vor.u32 %v1962_v63, %v1577_v62 }
  0x43   :  { %1035 = vmatpush.bf16.msrb.mxu0 %v1710_v17  ;;  %v1834_v3 = vor.u32 %v2022_v59, %v1831_v60  ;;  %v2018_v5 = vld [vmem:[#allocation8 + $0x2c0] sm:$0xf0]  ;;  %v2015_v7 = vld [vmem:[#allocation8 + $0x2ac] sm:$0xf]  ;;  %v1549_v10 = vld [vmem:[#allocation8 + $0xb0] sm:$0xf] }
  0x44   :  { %1044 = vmatpush.bf16.msrb.mxu1 %v1602_v20  ;;  %v1681_v20 = vld [vmem:[#allocation8 + $0x1c0] sm:$0xf]  ;;  %v1955_v11 = vld [vmem:[#allocation8 + $0xc8] sm:$0xf0]  ;;  %v1952_v12 = vld [vmem:[#allocation8 + $0xb4] sm:$0xf]  ;;  %v1802_v14 = vor.u32 %v2018_v5, %v1801_v4 }
  0x45   :  { %1057 = vmatpush.bf16.msrb.mxu2 %v1826_v28  ;;  %v1682_v37 = vor.u32 %v1989_v21, %v1681_v20  ;;  %v1945_v21 = vld [vmem:[#allocation8 + $0x7c] sm:$0xf]  ;;  %v2008_v27 = vld [vmem:[#allocation8 + $0x274] sm:$0xf]  ;;  %v1931_v45 = vld [vmem:[#allocation8 + $0xc] sm:$0xf] }
  0x46   :  { %1023 = vmatpush.bf16.msra.mxu3 %v1458_v23  ;;  %v1941_v31 = vld [vmem:[#allocation8 + $0x58] sm:$0xf0]  ;;  %v1717_v48 = vld [vmem:[#allocation8 + $0x200] sm:$0xf]  ;;  %v1987_v57 = vld [vmem:[#allocation8 + $0x1cc] sm:$0xf] }
  0x47   :  { %1036 = vmatpush.bf16.msrb.mxu0 %v1682_v37  ;;  %v2004_v37 = vld [vmem:[#allocation8 + $0x250] sm:$0xf0]  ;;  %v2001_v39 = vld [vmem:[#allocation8 + $0x23c] sm:$0xf] }
  0x48   :  { %1045 = vmatpush.bf16.msrb.mxu1 %v1574_v34  ;;  %v1666_v34 = vor.u32 %v1980_v16, %v1663_v18  ;;  %v1550_v16 = vor.u32 %v1955_v11, %v1549_v10  ;;  %v1521_v18 = vld [vmem:[#allocation8 + $0x78] sm:$0xf]  ;;  %v176_v60 = vld [vmem:[%s2412_s4] sm:$0x3]  ;;  %s2246_s4 = smov [#allocation11]  }
  0x49   :  { %1058 = vmatpush.bf16.msrb.mxu2 %v1798_v40  ;;  %v1686_v40 = vor.u32 %v1986_v24, %v1683_v25  ;;  %v1773_v24 = vld [vmem:[#allocation8 + $0x270] sm:$0xf]  ;;  %v2011_v25 = vld [vmem:[#allocation8 + $0x288] sm:$0xf0]  ;;  %v179_v5 = vperm.slane %v176_v60, 1  ;;  %s1360_s30 = sshll.u32 %s2246_s4, 4  ;;  %s1361_s30 = int_to_ptr.vmem [resolvable:$true] %s1360_s30 }
  0x4a   :  { %1068 = vmatpush.bf16.msrb.mxu3 %v1662_v30  ;;  %v1774_v26 = vor.u32 %v2011_v25, %v1773_v24  ;;  %v1493_v30 = vld [vmem:[#allocation8 + $0x40] sm:$0xf]  ;;  %v1613_v24 = vld [vmem:[#allocation8 + $0x128] sm:$0xf]  ;;  %v1970_v25 = vld [vmem:[#allocation8 + $0x140] sm:$0xf0] }
  0x4b   :  { %1081 = vmatpush.bf16.msra.mxu0 %v1886_v41  ;;  %v1494_v32 = vor.u32 %v1941_v31, %v1493_v30  ;;  %v1865_v31 = vld [vmem:[#allocation8 + $0x320] sm:$0xf] }
  0x4c   :  { %1046 = vmatpush.bf16.msrb.mxu1 %v1546_v46  ;;  %v1634_v46 = vor.u32 %v1976_v36, %v1633_v35  ;;  %v1745_v36 = vld [vmem:[#allocation8 + $0x238] sm:$0xf] }
  0x4d   :  { %1059 = vmatpush.bf16.msrb.mxu2 %v1770_v52  ;;  %v1966_v52 = vld [vmem:[#allocation8 + $0x124] sm:$0xf]  ;;  %v1746_v38 = vor.u32 %v2004_v37, %v1745_v36  ;;  %v1614_v36 = vor.u32 %v1970_v25, %v1613_v24  ;;  %v1473_v24 = vld [vmem:[#allocation8 + $0x10] sm:$0xf]  ;;  %v1935_v25 = vld [vmem:[#allocation8 + $0x28] sm:$0xf0] }
  0x4e   :  { %1069 = vmatpush.bf16.msrb.mxu3 %v1634_v46  ;;  %v1467_v46 = vld [vmem:[#allocation8 + $0x24] sm:$0xf0] }
  0x4f   :  { %1082 = vmatpush.bf16.msra.mxu0 %v1858_v54  ;;  %v1470_v47 = vor.u32 %v1931_v45, %v1467_v46  ;;  %v1689_v54 = vld [vmem:[#allocation8 + $0x1c8] sm:$0xf]  ;;  %v2026_v46 = vld [vmem:[#allocation8 + $0x300] sm:$0xf0] }
  0x50   :  { %1047 = vmatpush.bf16.msrb.mxu1 %v1518_v58  ;;  %v1606_v58 = vor.u32 %v1969_v51, %v1605_v50  ;;  %v1994_v51 = vld [vmem:[#allocation8 + $0x204] sm:$0xf]  ;;  %v1837_v45 = vld [vmem:[#allocation8 + $0x2e8] sm:$0xf] }
  0x51   :  { %1060 = vmatpush.bf16.msrb.mxu2 %v1742_v1  ;;  %v1579_v1 = vld [vmem:[#allocation8 + $0x104] sm:$0xf0] }
  0x52   :  { %1070 = vmatpush.bf16.msrb.mxu3 %v1606_v58  ;;  %v1691_v58 = vld [vmem:[#allocation8 + $0x1e4] sm:$0xf0] }
  0x53   :  { %1083 = vmatpush.bf16.msra.mxu0 %v1830_v2  ;;  %v1694_v59 = vor.u32 %v1987_v57, %v1691_v58  ;;  %v1981_v2 = vld [vmem:[#allocation8 + $0x19c] sm:$0xf]  ;;  %v1809_v57 = vld [vmem:[#allocation8 + $0x2b0] sm:$0xf]  ;;  %v2019_v58 = vld [vmem:[#allocation8 + $0x2c8] sm:$0xf0] }
  0x54   :  { %1048 = vmatpush.bf16.msrb.mxu1 %v1490_v9  ;;  %v1582_v9 = vor.u32 %v1959_v0, %v1579_v1  ;;  %v1669_v0 = vld [vmem:[#allocation8 + $0x198] sm:$0xf]  ;;  %v1984_v1 = vld [vmem:[#allocation8 + $0x1b0] sm:$0xf0] }
  0x55   :  { %1061 = vmatpush.bf16.msrb.mxu2 %v1714_v19  ;;  %v1948_v19 = vld [vmem:[#allocation8 + $0x90] sm:$0xf0] }
  0x56   :  { %1071 = vmatpush.bf16.msrb.mxu3 %v1578_v6  ;;  %v1522_v20 = vor.u32 %v1948_v19, %v1521_v18  ;;  %v2040_v18 = vld [vmem:[#allocation8 + $0x370] sm:$0xf0]  ;;  %v2037_v19 = vld [vmem:[#allocation8 + $0x35c] sm:$0xf] }
  0x57   :  { %1084 = vmatpush.bf16.msra.mxu0 %v1802_v14  ;;  %v1643_v14 = vld [vmem:[#allocation8 + $0x17c] sm:$0xf0] }
  0x58   :  { %1049 = vmatpush.bf16.msrb.mxu1 %v1462_v29 }
  0x59   :  { %1062 = vmatpush.bf16.msrb.mxu2 %v1686_v40  ;;  %v1747_v40 = vld [vmem:[#allocation8 + $0x254] sm:$0xf0] }
  0x5a   :  { %1072 = vmatpush.bf16.msrb.mxu3 %v1550_v16  ;;  %v1750_v41 = vor.u32 %v2001_v39, %v1747_v40  ;;  %v1893_v16 = vld [vmem:[#allocation8 + $0x358] sm:$0xf]  ;;  %v1963_v40 = vld [vmem:[#allocation8 + $0x108] sm:$0xf0] }
  0x5b   :  { %1085 = vmatpush.bf16.msra.mxu0 %v1774_v26  ;;  %v1967_v26 = vld [vmem:[#allocation8 + $0x12c] sm:$0xf] }
  0x5e   :  { %1073 = vmatpush.bf16.msrb.mxu3 %v1522_v20  ;;  %v1895_v20 = vld [vmem:[#allocation8 + $0x374] sm:$0xf0] }
  0x5f   :  { %1086 = vmatpush.bf16.msra.mxu0 %v1746_v38  ;;  %v1898_v30 = vor.u32 %v2037_v19, %v1895_v20  ;;  %v1585_v38 = vld [vmem:[#allocation8 + $0xf0] sm:$0xf]  ;;  %v2005_v19 = vld [vmem:[#allocation8 + $0x258] sm:$0xf0]  ;;  %v2002_v20 = vld [vmem:[#allocation8 + $0x244] sm:$0xf] }
  0x62   :  { %1074 = vmatpush.bf16.msrb.mxu3 %v1494_v32 }
  0xa5   :  { %v152_v8 = vpop.f32.mrf.mxu0 }
  0xa6   :  { %v153_v13 = vadd.f32 %v2054_v61, %v152_v8  ;;  %v1610_v61 = vor.u32 %v1966_v52, %v1607_v53  ;;  %v1803_v8 = vld [vmem:[#allocation8 + $0x2c4] sm:$0xf0]  ;;  %v1719_v52 = vld [vmem:[#allocation8 + $0x21c] sm:$0xf0] }
  0xa7   :  { %v1806_v15 = vor.u32 %v2015_v7, %v1803_v8  ;;  %v1722_v53 = vor.u32 %v1994_v51, %v1719_v52  ;;  %v1670_v7 = vor.u32 %v1984_v1, %v1669_v0  ;;  %v1557_v51 = vld [vmem:[#allocation8 + $0xb8] sm:$0xf]  ;;  %v1956_v52 = vld [vmem:[#allocation8 + $0xd0] sm:$0xf0]  ;;  %v1949_v0 = vld [vmem:[#allocation8 + $0x98] sm:$0xf0] }
  0xa8   :  { %v157_v22 = vmul.f32 0.01, %v153_v13  ;;  %vm156_vm1 = vcmp.gt.f32.partialorder %v153_v13, 0.0  ;;  %v1946_v1 = vld [vmem:[#allocation8 + $0x84] sm:$0xf] }
  0xaa   :  { %v158_v28 = vsel %vm156_vm1, %v153_v13, %v157_v22  ;;  %v1551_v13 = vld [vmem:[#allocation8 + $0xcc] sm:$0xf0]  ;;  %v1523_v22 = vld [vmem:[#allocation8 + $0x94] sm:$0xf0] }
  0xab   :  { %v159_v33 = vpack.c.bf16 %v158_v28, %v158_v28  ;;  %v1554_v17 = vor.u32 %v1952_v12, %v1551_v13  ;;  %v1526_v23 = vor.u32 %v1945_v21, %v1523_v22  ;;  %v1775_v28 = vld [vmem:[#allocation8 + $0x28c] sm:$0xf0]  ;;  %v1977_v12 = vld [vmem:[#allocation8 + $0x178] sm:$0xf0]  ;;  %v1974_v13 = vld [vmem:[#allocation8 + $0x164] sm:$0xf] }
  0xac   :  { %v1778_v29 = vor.u32 %v2008_v27, %v1775_v28  ;;  %v1615_v27 = vld [vmem:[#allocation8 + $0x144] sm:$0xf0] }
  0xad   :  { %v154_v42 = vpop.f32.mrf.mxu0  ;;  %270 = vmatmul.bf16.vlgmr.msra.gmra.mxu1 %v159_v33  ;;  %283 = vmatmul.bf16.vlgmr.msra.gmra.mxu2 %v159_v33  ;;  %v1938_v33 = vld [vmem:[#allocation8 + $0x44] sm:$0xf]  ;;  %v1618_v37 = vor.u32 %v1967_v26, %v1615_v27  ;;  %v1932_v26 = vld [vmem:[#allocation8 + $0x14] sm:$0xf]  ;;  %v1475_v27 = vld [vmem:[#allocation8 + $0x2c] sm:$0xf0] }
  0xae   :  { %1094 = vmatpush.bf16.msra.mxu1 %v1666_v34  ;;  %1107 = vmatpush.bf16.msra.mxu2 %v1890_v43  ;;  %v1495_v34 = vld [vmem:[#allocation8 + $0x5c] sm:$0xf0]  ;;  %v1465_v42 = vld [vmem:[#allocation8 + $0x8] sm:$0xf]  ;;  %v1934_v43 = vld [vmem:[#allocation8 + $0x20] sm:$0xf0] }
  0xaf   :  { %v1498_v35 = vor.u32 %v1938_v33, %v1495_v34  ;;  %v1466_v44 = vor.u32 %v1934_v43, %v1465_v42  ;;  %v2033_v33 = vld [vmem:[#allocation8 + $0x338] sm:$0xf0]  ;;  %v2030_v34 = vld [vmem:[#allocation8 + $0x324] sm:$0xf]  ;;  %v1587_v42 = vld [vmem:[#allocation8 + $0x10c] sm:$0xf0] }
  0xb0   :  { %v1866_v43 = vor.u32 %v2033_v33, %v1865_v31  ;;  %v1985_v31 = vld [vmem:[#allocation8 + $0x1b8] sm:$0xf0]  ;;  %v1725_v33 = vld [vmem:[#allocation8 + $0x208] sm:$0xf] }
  0xb1   :  { %1075 = vmatpush.bf16.msrb.mxu3 %v1466_v44 }
  0xb2   :  { %1095 = vmatpush.bf16.msra.mxu1 %v1638_v49  ;;  %1108 = vmatpush.bf16.msra.mxu2 %v1862_v55  ;;  %v1997_v49 = vld [vmem:[#allocation8 + $0x218] sm:$0xf0]  ;;  %v1990_v55 = vld [vmem:[#allocation8 + $0x1e0] sm:$0xf0] }
  0xb3   :  { %v1718_v50 = vor.u32 %v1997_v49, %v1717_v48  ;;  %v1690_v56 = vor.u32 %v1990_v55, %v1689_v54  ;;  %v1839_v48 = vld [vmem:[#allocation8 + $0x304] sm:$0xf0]  ;;  %v1586_v49 = vor.u32 %v1963_v40, %v1585_v38  ;;  %v1559_v54 = vld [vmem:[#allocation8 + $0xd4] sm:$0xf0]  ;;  %v1838_v55 = vor.u32 %v2026_v46, %v1837_v45  ;;  %v1991_v45 = vld [vmem:[#allocation8 + $0x1e8] sm:$0xf0] }
  0xb4   :  { %v1478_v38 = vor.u32 %v1932_v26, %v1475_v27  ;;  %v1988_v46 = vld [vmem:[#allocation8 + $0x1d4] sm:$0xf]  ;;  %v1705_v27 = vld [vmem:[#allocation8 + $0x1d8] sm:$0xf] }
  0xb5   :  { %1087 = vmatpush.bf16.msra.mxu0 %v1718_v50 }
  0xb6   :  { %1096 = vmatpush.bf16.msra.mxu1 %v1610_v61  ;;  %1109 = vmatpush.bf16.msra.mxu2 %v1834_v3  ;;  %v178_v61 = vperm.slane %v176_v60, 0  ;;  %v1671_v3 = vld [vmem:[#allocation8 + $0x1b4] sm:$0xf0]  ;;  %v1811_v60 = vld [vmem:[#allocation8 + $0x2cc] sm:$0xf0] }
  0xb7   :  { %v1674_v8 = vor.u32 %v1981_v2, %v1671_v3  ;;  %v1531_v2 = vld [vmem:[#allocation8 + $0x9c] sm:$0xf0]  ;;  %v1810_v3 = vor.u32 %v2019_v58, %v1809_v57  ;;  %v2034_v57 = vld [vmem:[#allocation8 + $0x340] sm:$0xf0] }
  0xb9   :  { %1088 = vmatpush.bf16.msra.mxu0 %v1690_v56 }
  0xba   :  { %1097 = vmatpush.bf16.msra.mxu1 %v1582_v9  ;;  %1110 = vmatpush.bf16.msra.mxu2 %v1806_v15  ;;  %v1641_v9 = vld [vmem:[#allocation8 + $0x160] sm:$0xf] }
  0xbb   :  { %v1642_v22 = vor.u32 %v1977_v12, %v1641_v9  ;;  %v1501_v12 = vld [vmem:[#allocation8 + $0x48] sm:$0xf] }
  0xbe   :  { %1098 = vmatpush.bf16.msra.mxu1 %v1554_v17  ;;  %1111 = vmatpush.bf16.msra.mxu2 %v1778_v29  ;;  %v1894_v29 = vor.u32 %v2040_v18, %v1893_v16  ;;  %v1753_v18 = vld [vmem:[#allocation8 + $0x240] sm:$0xf] }
  0xc2   :  { %1099 = vmatpush.bf16.msra.mxu1 %v1526_v23  ;;  %1112 = vmatpush.bf16.msra.mxu2 %v1750_v41  ;;  %v1646_v23 = vor.u32 %v1974_v13, %v1643_v14  ;;  %v1960_v41 = vld [vmem:[#allocation8 + $0xf4] sm:$0xf]  ;;  %v1942_v13 = vld [vmem:[#allocation8 + $0x60] sm:$0xf0]  ;;  %v1939_v14 = vld [vmem:[#allocation8 + $0x4c] sm:$0xf] }
  0xc3   :  { %v1590_v50 = vor.u32 %v1960_v41, %v1587_v42  ;;  %v1649_v42 = vld [vmem:[#allocation8 + $0x168] sm:$0xf] }
  0xc6   :  { %1100 = vmatpush.bf16.msra.mxu1 %v1498_v35  ;;  %1113 = vmatpush.bf16.msra.mxu2 %v1722_v53  ;;  %v1867_v35 = vld [vmem:[#allocation8 + $0x33c] sm:$0xf0]  ;;  %v1953_v53 = vld [vmem:[#allocation8 + $0xbc] sm:$0xf] }
  0xc7   :  { %v1870_v44 = vor.u32 %v2030_v34, %v1867_v35  ;;  %v1998_v34 = vld [vmem:[#allocation8 + $0x220] sm:$0xf0]  ;;  %v1995_v35 = vld [vmem:[#allocation8 + $0x20c] sm:$0xf] }
  0xc8   :  { %v1726_v40 = vor.u32 %v1998_v34, %v1725_v33 }
  0xca   :  { %1101 = vmatpush.bf16.msra.mxu1 %v1470_v47  ;;  %1114 = vmatpush.bf16.msra.mxu2 %v1694_v59  ;;  %v2023_v47 = vld [vmem:[#allocation8 + $0x2ec] sm:$0xf]  ;;  %v2016_v59 = vld [vmem:[#allocation8 + $0x2b4] sm:$0xf] }
  0xcb   :  { %v1842_v56 = vor.u32 %v2023_v47, %v1839_v48  ;;  %v1699_v47 = vld [vmem:[#allocation8 + $0x1ec] sm:$0xf0]  ;;  %v1901_v48 = vld [vmem:[#allocation8 + $0x360] sm:$0xf] }
 0x12a   :  { %v271_v62 = vpop.f32.mrf.mxu1 }
 0x12b   :  { %v272_v63 = vadd.f32 %v271_v62, %v178_v61  ;;  %v1558_v61 = vor.u32 %v1956_v52, %v1557_v51  ;;  %v1562_v62 = vor.u32 %v1953_v53, %v1559_v54  ;;  %v1702_v52 = vor.u32 %v1988_v46, %v1699_v47  ;;  %v1621_v53 = vld [vmem:[#allocation8 + $0x130] sm:$0xf]  ;;  %v1971_v54 = vld [vmem:[#allocation8 + $0x148] sm:$0xf0] }
 0x12c   :  { %v1622_v58 = vor.u32 %v1971_v54, %v1621_v53 }
 0x12d   :  { %vm288_vm2 = vcmp.gt.f32.partialorder %v272_v63, 0.0  ;;  %v290_v4 = vmul.f32 0.01, %v272_v63 }
 0x12f   :  { %v292_v6 = vsel %vm288_vm2, %v272_v63, %v290_v4  ;;  %v1529_v63 = vld [vmem:[#allocation8 + $0x80] sm:$0xf]  ;;  %v1814_v4 = vor.u32 %v2016_v59, %v1811_v60  ;;  %v1593_v59 = vld [vmem:[#allocation8 + $0xf8] sm:$0xf]  ;;  %v1964_v60 = vld [vmem:[#allocation8 + $0x110] sm:$0xf0] }
 0x130   :  { %v2308_v10 = vpack.c.bf16 %v292_v6, %v292_v6  ;;  %v284_v11 = vpop.f32.mrf.mxu2  ;;  %v2012_v6 = vld [vmem:[#allocation8 + $0x290] sm:$0xf0]  ;;  %v1530_v9 = vor.u32 %v1949_v0, %v1529_v63  ;;  %v2027_v63 = vld [vmem:[#allocation8 + $0x308] sm:$0xf0]  ;;  %v1594_v0 = vor.u32 %v1964_v60, %v1593_v59 }
 0x131   :  { %v285_v15 = vadd.f32 %v284_v11, %v179_v5  ;;  %v1781_v5 = vld [vmem:[#allocation8 + $0x278] sm:$0xf]  ;;  %v1534_v11 = vor.u32 %v1946_v1, %v1531_v2  ;;  %v1565_v1 = vld [vmem:[#allocation8 + $0xc0] sm:$0xf]  ;;  %v1957_v2 = vld [vmem:[#allocation8 + $0xd8] sm:$0xf0] }
 0x132   :  { %v273_v17 = vpop.f32.mrf.mxu1  ;;  %1024 = vmatmul.bf16.vlgmr.msra.gmra.mxu3 %v2308_v10  ;;  %1050 = vmatmul.bf16.vlgmr.msrb.gmra.mxu1 %v2308_v10  ;;  %v1782_v16 = vor.u32 %v2012_v6, %v1781_v5  ;;  %v2020_v5 = vld [vmem:[#allocation8 + $0x2d0] sm:$0xf0]  ;;  %v1566_v6 = vor.u32 %v1957_v2, %v1565_v1 }
 0x133   :  { %vm289_vm3 = vcmp.gt.f32.partialorder %v285_v15, 0.0  ;;  %v291_v21 = vmul.f32 0.01, %v285_v15  ;;  %1120 = vmatpush.bf16.msra.mxu3 %v1670_v7  ;;  %1146 = vmatpush.bf16.msrb.mxu1 %v1674_v8  ;;  %v2009_v7 = vld [vmem:[#allocation8 + $0x27c] sm:$0xf] }
 0x134   :  { %v1783_v8 = vld [vmem:[#allocation8 + $0x294] sm:$0xf0] }
 0x135   :  { %v293_v28 = vsel %vm289_vm3, %v285_v15, %v291_v21  ;;  %v1503_v15 = vld [vmem:[#allocation8 + $0x64] sm:$0xf0]  ;;  %v1786_v17 = vor.u32 %v2009_v7, %v1783_v8  ;;  %v1755_v21 = vld [vmem:[#allocation8 + $0x25c] sm:$0xf0]  ;;  %v1950_v8 = vld [vmem:[#allocation8 + $0xa0] sm:$0xf0] }
 0x136   :  { %v2312_v32 = vpack.c.bf16 %v293_v28, %v293_v28  ;;  %v1754_v28 = vor.u32 %v2005_v19, %v1753_v18  ;;  %v1537_v7 = vld [vmem:[#allocation8 + $0x88] sm:$0xf]  ;;  %v2006_v18 = vld [vmem:[#allocation8 + $0x260] sm:$0xf0]  ;;  %vm1343_vm3 = vcmask 1041408  }
 0x137   :  { %1121 = vmatpush.bf16.msra.mxu3 %v1642_v22  ;;  %1147 = vmatpush.bf16.msrb.mxu1 %v1646_v23  ;;  %v1502_v22 = vor.u32 %v1942_v13, %v1501_v12  ;;  %v1506_v23 = vor.u32 %v1939_v14, %v1503_v15  ;;  %v2013_v12 = vld [vmem:[#allocation8 + $0x298] sm:$0xf0]  ;;  %v1538_v13 = vor.u32 %v1950_v8, %v1537_v7  ;;  %v1509_v14 = vld [vmem:[#allocation8 + $0x50] sm:$0xf]  ;;  %v1943_v15 = vld [vmem:[#allocation8 + $0x68] sm:$0xf0] }
 0x138   :  { %v286_v39 = vpop.f32.mrf.mxu2  ;;  %1037 = vmatmul.bf16.vlgmr.msrb.gmra.mxu0 %v2312_v32  ;;  %1063 = vmatmul.bf16.vlgmr.msrb.gmra.mxu2 %v2312_v32  ;;  %v1510_v19 = vor.u32 %v1943_v15, %v1509_v14 }
 0x139   :  { %1133 = vmatpush.bf16.msrb.mxu0 %v1894_v29  ;;  %1159 = vmatpush.bf16.msrb.mxu2 %v1898_v30  ;;  %v1758_v29 = vor.u32 %v2002_v20, %v1755_v21  ;;  %v1677_v30 = vld [vmem:[#allocation8 + $0x1a0] sm:$0xf]  ;;  %v1481_v20 = vld [vmem:[#allocation8 + $0x18] sm:$0xf]  ;;  %v1936_v21 = vld [vmem:[#allocation8 + $0x30] sm:$0xf0] }
 0x13a   :  { %v1678_v39 = vor.u32 %v1985_v31, %v1677_v30  ;;  %v2326_v31 = vld [vmem:[#allocation10] sm:$0xff] }
 0x13b   :  { %1122 = vmatpush.bf16.msra.mxu3 %v1614_v36  ;;  %1148 = vmatpush.bf16.msrb.mxu1 %v1618_v37  ;;  %v1727_v36 = vld [vmem:[#allocation8 + $0x224] sm:$0xf0]  ;;  %v1474_v37 = vor.u32 %v1935_v25, %v1473_v24  ;;  %v1999_v24 = vld [vmem:[#allocation8 + $0x228] sm:$0xf0]  ;;  %v1482_v25 = vor.u32 %v1936_v21, %v1481_v20  ;;  %v426_v33 = vperm.slane %v2326_v31, 0  ;;  %v428_v46 = vperm.slane %v2326_v31, 2 }
 0x13c   :  { %v1730_v41 = vor.u32 %v1995_v35, %v1727_v36  ;;  %v427_v36 = vperm.slane %v2326_v31, 1  ;;  %v431_v14 = vperm.slane %v2326_v31, 5 }
 0x13d   :  { %1134 = vmatpush.bf16.msrb.mxu0 %v1866_v43  ;;  %1160 = vmatpush.bf16.msrb.mxu2 %v1870_v44  ;;  %v1978_v43 = vld [vmem:[#allocation8 + $0x180] sm:$0xf0]  ;;  %v1697_v44 = vld [vmem:[#allocation8 + $0x1d0] sm:$0xf] }
 0x13e   :  { %v1698_v51 = vor.u32 %v1991_v45, %v1697_v44 }
 0x13f   :  { %1123 = vmatpush.bf16.msra.mxu3 %v1586_v49  ;;  %1149 = vmatpush.bf16.msrb.mxu1 %v1590_v50  ;;  %v2041_v49 = vld [vmem:[#allocation8 + $0x378] sm:$0xf0]  ;;  %v1650_v50 = vor.u32 %v1978_v43, %v1649_v42 }
 0x141   :  { %1135 = vmatpush.bf16.msrb.mxu0 %v1838_v55  ;;  %1161 = vmatpush.bf16.msrb.mxu2 %v1842_v56  ;;  %v1902_v55 = vor.u32 %v2041_v49, %v1901_v48  ;;  %v1873_v56 = vld [vmem:[#allocation8 + $0x328] sm:$0xf] }
 0x142   :  { %1076 = vmatmul.bf16.vlgmr.msrb.gmra.mxu3 %v2308_v10  ;;  %1102 = vmatmul.bf16.vlgmr.msra.gmra.mxu1 %v2308_v10 }
 0x143   :  { %1124 = vmatpush.bf16.msra.mxu3 %v1558_v61  ;;  %1150 = vmatpush.bf16.msrb.mxu1 %v1562_v62  ;;  %v1874_v61 = vor.u32 %v2034_v57, %v1873_v56  ;;  %v1845_v62 = vld [vmem:[#allocation8 + $0x2f0] sm:$0xf] }
 0x145   :  { %1136 = vmatpush.bf16.msrb.mxu0 %v1810_v3  ;;  %1162 = vmatpush.bf16.msrb.mxu2 %v1814_v4  ;;  %v1846_v3 = vor.u32 %v2027_v63, %v1845_v62  ;;  %v1817_v4 = vld [vmem:[#allocation8 + $0x2b8] sm:$0xf] }
 0x147   :  { %1125 = vmatpush.bf16.msra.mxu3 %v1530_v9  ;;  %1151 = vmatpush.bf16.msrb.mxu1 %v1534_v11  ;;  %v1818_v9 = vor.u32 %v2020_v5, %v1817_v4  ;;  %v1789_v11 = vld [vmem:[#allocation8 + $0x280] sm:$0xf] }
 0x148   :  { %1089 = vmatmul.bf16.vlgmr.msra.gmra.mxu0 %v2312_v32  ;;  %1115 = vmatmul.bf16.vlgmr.msra.gmra.mxu2 %v2312_v32 }
 0x149   :  { %1137 = vmatpush.bf16.msrb.mxu0 %v1782_v16  ;;  %1163 = vmatpush.bf16.msrb.mxu2 %v1786_v17  ;;  %v1790_v16 = vor.u32 %v2013_v12, %v1789_v11  ;;  %v1761_v17 = vld [vmem:[#allocation8 + $0x248] sm:$0xf] }
 0x14b   :  { %1126 = vmatpush.bf16.msra.mxu3 %v1502_v22  ;;  %1152 = vmatpush.bf16.msrb.mxu1 %v1506_v23  ;;  %v1762_v22 = vor.u32 %v2006_v18, %v1761_v17  ;;  %v1733_v23 = vld [vmem:[#allocation8 + $0x210] sm:$0xf]  ;;  %v430_v17 = vperm.slane %v2326_v31, 4 }
 0x14c   :  { %v1734_v26 = vor.u32 %v1999_v24, %v1733_v23 }
 0x14d   :  { %1138 = vmatpush.bf16.msrb.mxu0 %v1754_v28  ;;  %1164 = vmatpush.bf16.msrb.mxu2 %v1758_v29  ;;  %v1992_v28 = vld [vmem:[#allocation8 + $0x1f0] sm:$0xf0] }
 0x14e   :  { %v1706_v29 = vor.u32 %v1992_v28, %v1705_v27 }
 0x14f   :  { %1127 = vmatpush.bf16.msra.mxu3 %v1474_v37  ;;  %1153 = vmatpush.bf16.msrb.mxu1 %v1478_v38 }
 0x151   :  { %1139 = vmatpush.bf16.msrb.mxu0 %v1726_v40  ;;  %1165 = vmatpush.bf16.msrb.mxu2 %v1730_v41 }
 0x152   :  { %1128 = vmatmul.bf16.vlgmr.msra.gmra.mxu3 %v2308_v10  ;;  %1154 = vmatmul.bf16.vlgmr.msrb.gmra.mxu1 %v2308_v10 }
 0x153   :  { %1172 = vmatpush.bf16.msrb.mxu3 %v1678_v39 }
 0x155   :  { %1140 = vmatpush.bf16.msrb.mxu0 %v1698_v51  ;;  %1166 = vmatpush.bf16.msrb.mxu2 %v1702_v52  ;;  %v429_v51 = vperm.slane %v2326_v31, 3 }
 0x157   :  { %1173 = vmatpush.bf16.msrb.mxu3 %v1650_v50 }
 0x158   :  { %1141 = vmatmul.bf16.vlgmr.msrb.gmra.mxu0 %v2312_v32  ;;  %1167 = vmatmul.bf16.vlgmr.msrb.gmra.mxu2 %v2312_v32 }
 0x159   :  { %1185 = vmatpush.bf16.msra.mxu0 %v1902_v55 }
 0x15b   :  { %1174 = vmatpush.bf16.msrb.mxu3 %v1622_v58 }
 0x15d   :  { %1186 = vmatpush.bf16.msra.mxu0 %v1874_v61 }
 0x15f   :  { %1175 = vmatpush.bf16.msrb.mxu3 %v1594_v0 }
 0x161   :  { %1187 = vmatpush.bf16.msra.mxu0 %v1846_v3 }
 0x163   :  { %1176 = vmatpush.bf16.msrb.mxu3 %v1566_v6 }
 0x165   :  { %1188 = vmatpush.bf16.msra.mxu0 %v1818_v9 }
 0x167   :  { %1177 = vmatpush.bf16.msrb.mxu3 %v1538_v13 }
 0x169   :  { %1189 = vmatpush.bf16.msra.mxu0 %v1790_v16 }
 0x16b   :  { %1178 = vmatpush.bf16.msrb.mxu3 %v1510_v19 }
 0x16d   :  { %1190 = vmatpush.bf16.msra.mxu0 %v1762_v22 }
 0x16f   :  { %1179 = vmatpush.bf16.msrb.mxu3 %v1482_v25 }
 0x171   :  { %1191 = vmatpush.bf16.msra.mxu0 %v1734_v26 }
 0x172   :  { %1180 = vmatmul.bf16.vlgmr.msrb.gmra.mxu3 %v2308_v10 }
 0x175   :  { %1192 = vmatpush.bf16.msra.mxu0 %v1706_v29 }
 0x178   :  { %1193 = vmatmul.bf16.vlgmr.msra.gmra.mxu0 %v2312_v32 }
 0x1af   :  { %v1051_v30 = vpop.f32.mrf.mxu1 }
 0x1b0   :  { %v1052_v39 = vadd.f32 %v1051_v30, %v427_v36 }
 0x1b5   :  { %v1025_v34 = vpop.f32.mrf.mxu3  ;;  %v1038_v35 = vpop.f32.mrf.mxu0 }
 0x1b6   :  { %v1026_v37 = vadd.f32 %v1025_v34, %v426_v33 }
 0x1b7   :  { %v1053_v38 = vpop.f32.mrf.mxu1 }
 0x1b8   :  { %v1039_v40 = vadd.f32 %v1038_v35, %v1026_v37 }
 0x1ba   :  { %v1903_v44 = vmul.f32 -1.442695, %v1039_v40 }
 0x1bb   :  { %v1064_v41 = vpop.f32.mrf.mxu2 }
 0x1bc   :  { %v1065_v42 = vadd.f32 %v1064_v41, %v1052_v39 }
 0x1bd   :  { %v1027_v43 = vpop.f32.mrf.mxu3  ;;  %v1040_v10 = vpop.f32.mrf.mxu0 }
 0x1be   :  { %v1904_v45 = vmul.f32 -1.442695, %v1065_v42 }
 0x1bf   :  { %v1103_v32 = vpop.f32.mrf.mxu1 }
 0x1c0   :  { %2055 = vpow2.f32 %v1904_v45  ;;  %v1104_v57 = vadd.f32 %v1103_v32, %v429_v51 }
 0x1c1   :  { %2057 = vpow2.f32 %v1903_v44 }
 0x1c3   :  { %v1066_v47 = vpop.f32.mrf.mxu2 }
 0x1c5   :  { %v1077_v48 = vpop.f32.mrf.mxu3  ;;  %v1090_v49 = vpop.f32.mrf.mxu0 }
 0x1c6   :  { %v2056_v50 = vpop.eup %2055  ;;  %v1078_v52 = vadd.f32 %v1077_v48, %v428_v46 }
 0x1c7   :  { %v2332_v53 = vadd.f32 1.0, %v2056_v50  ;;  %v1105_v54 = vpop.f32.mrf.mxu1  ;;  %v2058_v55 = vpop.eup %2057 }
 0x1c8   :  { %v1091_v56 = vadd.f32 %v1090_v49, %v1078_v52  ;;  %v2335_v59 = vadd.f32 1.0, %v2058_v55 }
 0x1c9   :  { %2059 = vrcp.f32 %v2332_v53  ;;  %v1252_v24 = vand.u32 2147483648, %v2332_v53  ;;  %v1250_v28 = vand.u32 2147483647, %v2332_v53  ;;  %vm1246_vm5 = vweird.f32 %v2332_v53 }
 0x1ca   :  { %v1905_v58 = vmul.f32 -1.442695, %v1091_v56  ;;  %v1237_v34 = vand.u32 2147483648, %v2335_v59  ;;  %vm1231_vm14 = vweird.f32 %v2335_v59 }
 0x1cb   :  { %v1116_v60 = vpop.f32.mrf.mxu2  ;;  %v1253_v40 = vor.u32 1.1754944e-38, %v1252_v24  ;;  %vm2369_vm8 = vcmp.eq.f32.partialorder %v1250_v28, 8.507059e+37 }
 0x1cc   :  { %2061 = vpow2.f32 %v1905_v58  ;;  %v1117_v61 = vadd.f32 %v1116_v60, %v1104_v57  ;;  %v1235_v60 = vand.u32 2147483647, %v2335_v59 }
 0x1cd   :  { %v1079_v62 = vpop.f32.mrf.mxu3  ;;  %v1092_v63 = vpop.f32.mrf.mxu0  ;;  %2063 = vrcp.f32 %v2335_v59 }
 0x1ce   :  { %v1906_v0 = vmul.f32 -1.442695, %v1117_v61 }
 0x1cf   :  { %v1155_v1 = vpop.f32.mrf.mxu1  ;;  %v2338_v2 = vpop.eup %2059 }
 0x1d0   :  { %2065 = vpow2.f32 %v1906_v0  ;;  %v1242_v4 = vmul.f32 %v2338_v2, %v2332_v53  ;;  %v1156_v20 = vadd.f32 %v1155_v1, %v431_v14  ;;  %vm1247_vm4 = vweird.f32 %v2338_v2 }
 0x1d1   :  { %vm2365_vm7 = vmor %vm1246_vm5, %vm1247_vm4  ;;  %vm1345_vm4 = vcmask 1045508   ;;  %vm1236_vm5 = vcmp.eq.f32.partialorder %v1235_v60, 8.507059e+37 }
 0x1d2   :  { %v2062_v3 = vpop.eup %2061  ;;  %v1243_v12 = vsub.f32 1.0, %v1242_v4  ;;  %v1238_v4 = vor.u32 1.1754944e-38, %v1237_v34 }
 0x1d3   :  { %v2342_v5 = vadd.f32 1.0, %v2062_v3  ;;  %v1118_v6 = vpop.f32.mrf.mxu2  ;;  %v2344_v7 = vpop.eup %2063 }
 0x1d4   :  { %v1227_v16 = vmul.f32 %v2344_v7, %v2335_v59  ;;  %v1244_v19 = vmul.f32 %v2338_v2, %v1243_v12  ;;  %vm1232_vm12 = vweird.f32 %v2344_v7 }
 0x1d5   :  { %2067 = vrcp.f32 %v2342_v5  ;;  %v1129_v8 = vpop.f32.mrf.mxu3  ;;  %v1142_v9 = vpop.f32.mrf.mxu0  ;;  %v1267_v41 = vand.u32 2147483648, %v2342_v5  ;;  %vm1261_vm9 = vweird.f32 %v2342_v5  ;;  %v1265_v32 = vand.u32 2147483647, %v2342_v5  ;;  %vm2393_vm1 = vmor %vm1231_vm14, %vm1232_vm12 }
 0x1d6   :  { %v2066_v11 = vpop.eup %2065  ;;  %v1228_v23 = vsub.f32 1.0, %v1227_v16  ;;  %v1130_v30 = vadd.f32 %v1129_v8, %v430_v17  ;;  %v1245_v35 = vadd.f32 %v2338_v2, %v1244_v19 }
 0x1d7   :  { %v2347_v13 = vadd.f32 1.0, %v2066_v11  ;;  %v1157_v15 = vpop.f32.mrf.mxu1  ;;  %v1268_v52 = vor.u32 1.1754944e-38, %v1267_v41  ;;  %vm1266_vm0 = vcmp.eq.f32.partialorder %v1265_v32, 8.507059e+37 }
 0x1d8   :  { %v1229_v39 = vmul.f32 %v2344_v7, %v1228_v23  ;;  %v1143_v44 = vadd.f32 %v1142_v9, %v1130_v30  ;;  %v1249_v47 = vsel %vm2365_vm7, %v2338_v2, %v1245_v35 }
 0x1d9   :  { %2069 = vrcp.f32 %v2347_v13  ;;  %v1282_v46 = vand.u32 2147483648, %v2347_v13  ;;  %v1280_v50 = vand.u32 2147483647, %v2347_v13  ;;  %vm1276_vm13 = vweird.f32 %v2347_v13 }
 0x1da   :  { %v1230_v53 = vadd.f32 %v2344_v7, %v1229_v39  ;;  %v1907_v56 = vmul.f32 -1.442695, %v1143_v44  ;;  %v1254_v57 = vsel %vm2369_vm8, %v1253_v40, %v1249_v47 }
 0x1db   :  { %v2068_v18 = vpop.eup %2067  ;;  %v1168_v22 = vpop.f32.mrf.mxu2  ;;  %v1283_v58 = vor.u32 1.1754944e-38, %v1282_v46  ;;  %vm1281_vm2 = vcmp.eq.f32.partialorder %v1280_v50, 8.507059e+37  ;;  %v1338_v2 = vrot.slane %v1254_v57, 6 }
 0x1dc   :  { %v1257_v21 = vmul.f32 %v2068_v18, %v2342_v5  ;;  %v1169_v25 = vadd.f32 %v1168_v22, %v1156_v20  ;;  %vm1262_vm6 = vweird.f32 %v2068_v18  ;;  %v1234_v0 = vsel %vm2393_vm1, %v2344_v7, %v1230_v53 }
 0x1dd   :  { %v1131_v26 = vpop.f32.mrf.mxu3  ;;  %v1144_v27 = vpop.f32.mrf.mxu0  ;;  %vm2379_vm10 = vmor %vm1261_vm9, %vm1262_vm6  ;;  %vm1347_vm6 = vcmask 1043456   ;;  %v1239_v6 = vsel %vm1236_vm5, %v1238_v4, %v1234_v0  ;;  %v432_v7 = vperm.slane %v2326_v31, 6 }
 0x1de   :  { %v1258_v29 = vsub.f32 1.0, %v1257_v21  ;;  %v1908_v38 = vmul.f32 -1.442695, %v1169_v25  ;;  %v1344_v9 = vsel %vm1343_vm3, %v1239_v6, %v1338_v2 }
 0x1df   :  { %v2070_v33 = vpop.eup %2069 }
 0x1e0   :  { %v1259_v36 = vmul.f32 %v2068_v18, %v1258_v29  ;;  %v1272_v37 = vmul.f32 %v2070_v33, %v2347_v13  ;;  %vm1277_vm11 = vweird.f32 %v2070_v33  ;;  %2071 = vpow2.f32 %v1908_v38 }
 0x1e1   :  { %vm1278_vm15 = vmor %vm1276_vm13, %vm1277_vm11  ;;  %2073 = vpow2.f32 %v1907_v56 }
 0x1e2   :  { %v1260_v43 = vadd.f32 %v2068_v18, %v1259_v36  ;;  %v1273_v10 = vsub.f32 1.0, %v1272_v37 }
 0x1e3   :  { %v1170_v51 = vpop.f32.mrf.mxu2 }
 0x1e4   :  { %v1274_v49 = vmul.f32 %v2070_v33, %v1273_v10  ;;  %v1264_v54 = vsel %vm2379_vm10, %v2068_v18, %v1260_v43 }
 0x1e5   :  { %v1269_v62 = vsel %vm1266_vm0, %v1268_v52, %v1264_v54 }
 0x1e6   :  { %v1275_v55 = vadd.f32 %v2070_v33, %v1274_v49  ;;  %v2072_v3 = vpop.eup %2071  ;;  %v1339_v59 = vrot.slane %v1269_v62, 4 }
 0x1e7   :  { %v1224_v8 = vadd.f32 1.0, %v2072_v3  ;;  %v2074_v13 = vpop.eup %2073 }
 0x1e8   :  { %v1279_v63 = vsel %vm1278_vm15, %v2070_v33, %v1275_v55  ;;  %v1223_v16 = vadd.f32 1.0, %v2074_v13 }
 0x1e9   :  { %v1284_v1 = vsel %vm1281_vm2, %v1283_v58, %v1279_v63  ;;  %2075 = vrcp.f32 %v1224_v8  ;;  %v1312_v33 = vand.u32 2147483648, %v1224_v8  ;;  %vm1306_vm8 = vweird.f32 %v1224_v8 }
 0x1ea   :  { %v1340_v5 = vrot.slane %v1284_v1, 2  ;;  %2077 = vrcp.f32 %v1223_v16  ;;  %v1310_v36 = vand.u32 2147483647, %v1224_v8  ;;  %v1297_v39 = vand.u32 2147483648, %v1223_v16 }
 0x1eb   :  { %v1313_v40 = vor.u32 1.1754944e-38, %v1312_v33  ;;  %vm1291_vm13 = vweird.f32 %v1223_v16  ;;  %v1295_v32 = vand.u32 2147483647, %v1223_v16 }
 0x1ec   :  { %v1346_v11 = vsel %vm1345_vm4, %v1339_v59, %v1340_v5  ;;  %vm1311_vm11 = vcmp.eq.f32.partialorder %v1310_v36, 8.507059e+37  ;;  %v1298_v50 = vor.u32 1.1754944e-38, %v1297_v39 }
 0x1ed   :  { %v1348_v12 = vsel %vm1347_vm6, %v1344_v9, %v1346_v11  ;;  %vm1296_vm2 = vcmp.eq.f32.partialorder %v1295_v32, 8.507059e+37 }
 0x1ee   :  { %1353 = vst [vmem:[#allocation11] sm:$0xff] %v1348_v12 }
 0x1ef   :  { %v2076_v19 = vpop.eup %2075 }
 0x1f0   :  { %v1302_v21 = vmul.f32 %v2076_v19, %v1224_v8  ;;  %v2078_v24 = vpop.eup %2077  ;;  %vm1307_vm7 = vweird.f32 %v2076_v19 }
 0x1f1   :  { %v1287_v27 = vmul.f32 %v2078_v24, %v1223_v16  ;;  %vm1308_vm9 = vmor %vm1306_vm8, %vm1307_vm7  ;;  %vm1292_vm10 = vweird.f32 %v2078_v24 }
 0x1f2   :  { %v1303_v25 = vsub.f32 1.0, %v1302_v21  ;;  %vm1293_vm15 = vmor %vm1291_vm13, %vm1292_vm10 }
 0x1f3   :  { %v1288_v29 = vsub.f32 1.0, %v1287_v27 }
 0x1f4   :  { %v1304_v28 = vmul.f32 %v2076_v19, %v1303_v25 }
 0x1f5   :  { %v1181_v14 = vpop.f32.mrf.mxu3  ;;  %v1194_v15 = vpop.f32.mrf.mxu0  ;;  %v1289_v35 = vmul.f32 %v2078_v24, %v1288_v29 }
 0x1f6   :  { %v1182_v17 = vadd.f32 %v1181_v14, %v432_v7  ;;  %v1305_v30 = vadd.f32 %v2076_v19, %v1304_v28 }
 0x1f7   :  { %v1290_v43 = vadd.f32 %v2078_v24, %v1289_v35 }
 0x1f8   :  { %v1195_v18 = vadd.f32 %v1194_v15, %v1182_v17  ;;  %v1309_v38 = vsel %vm1308_vm9, %v2076_v19, %v1305_v30 }
 0x1f9   :  { %v1314_v44 = vsel %vm1311_vm11, %v1313_v40, %v1309_v38  ;;  %v1294_v47 = vsel %vm1293_vm15, %v2078_v24, %v1290_v43 }
 0x1fa   :  { %v1909_v20 = vmul.f32 -1.442695, %v1195_v18  ;;  %v1341_v49 = vrot.slane %v1314_v44, 6  ;;  %v1299_v53 = vsel %vm1296_vm2, %v1298_v50, %v1294_v47 }
 0x1fc   :  { %2079 = vpow2.f32 %v1909_v20  ;;  %v1349_v55 = vsel %vm1343_vm3, %v1299_v53, %v1341_v49 }
 0x1fd   :  { %v1183_v22 = vpop.f32.mrf.mxu3  ;;  %v1196_v23 = vpop.f32.mrf.mxu0 }
 0x202   :  { %v2080_v26 = vpop.eup %2079 }
 0x203   :  { %v1225_v31 = vadd.f32 1.0, %v2080_v26 }
 0x205   :  { %2081 = vrcp.f32 %v1225_v31  ;;  %v1327_v42 = vand.u32 2147483648, %v1225_v31  ;;  %v1325_v45 = vand.u32 2147483647, %v1225_v31  ;;  %vm1321_vm14 = vweird.f32 %v1225_v31 }
 0x207   :  { %v1328_v48 = vor.u32 1.1754944e-38, %v1327_v42  ;;  %vm1326_vm1 = vcmp.eq.f32.partialorder %v1325_v45, 8.507059e+37 }
 0x20b   :  { %v2082_v34 = vpop.eup %2081 }
 0x20c   :  { %v1317_v37 = vmul.f32 %v2082_v34, %v1225_v31  ;;  %vm1322_vm12 = vweird.f32 %v2082_v34 }
 0x20d   :  { %vm1323_vm0 = vmor %vm1321_vm14, %vm1322_vm12 }
 0x20e   :  { %v1318_v41 = vsub.f32 1.0, %v1317_v37 }
 0x210   :  { %v1319_v10 = vmul.f32 %v2082_v34, %v1318_v41 }
 0x212   :  { %v1320_v46 = vadd.f32 %v2082_v34, %v1319_v10 }
 0x214   :  { %v1324_v51 = vsel %vm1323_vm0, %v2082_v34, %v1320_v46 }
 0x215   :  { %v1329_v52 = vsel %vm1326_vm1, %v1328_v48, %v1324_v51 }
 0x216   :  { %v1342_v54 = vrot.slane %v1329_v52, 4 }
 0x218   :  { %v1350_v56 = vsel %vm1347_vm6, %v1349_v55, %v1342_v54 }
 0x219   :  { %1354 = vst [vmem:[#allocation11 + $0x8] sm:$0x3f] %v1350_v56 }
 0x21a   :  { %1365 = dma.vmem_to_hbm [thread:$0]  %s1361_s30, 224, %s1363_s10, [#allocation4]  }
 0x21b   :  { %2233 = dma.done.wait [#allocation4], 224  }
 0x21c   :  { %2234 = vsyncadd [#allocation4], 4294967072 }
 0x21d   :  { %1370 = vsyncpa [#allocation3], 1 }
 0x21e   :  { %1371 = vsyncpa [#allocation6], 1 }
 0x21f   :  { %1372 = vsyncpa [#allocation9], 1 }
 0x220   :  { %1373 = vsyncpa [#allocation4], 1 }

</bundles_post_ra>
